<compile_context>
chip_gen: v7x
topology: tpu7x:2x2x1
jax: 0.10.0
libtpu: 0.0.40
codegen_flags: <defaults>
</compile_context>

<pallas_src>
import jax
import jax.numpy as jnp
from jax.experimental import pallas as pl
from jax.experimental.pallas import tpu as pltpu

# ---- model config: MambaDynamicsModel(state_dim, action_dim, hidden_dim) with
#      Mamba2(d_model=hidden, d_state=64, d_conv=4, expand=2) and Mamba2 defaults
#      (headdim=64, ngroups=1, conv bias, no in/out_proj bias, gated RMSNorm) ----
STATE_DIM = 12
ACTION_DIM = 4
IN_DIM = STATE_DIM + ACTION_DIM   # 16
HIDDEN = 32
D_STATE = 64
D_CONV = 4
EXPAND = 2
HEADDIM = 64                      # Mamba2 default
NGROUPS = 1                       # Mamba2 default
D_INNER = EXPAND * HIDDEN         # 64
NHEADS = D_INNER // HEADDIM       # 1
CONV_DIM = D_INNER + 2 * NGROUPS * D_STATE                 # 192
D_IN_PROJ = 2 * D_INNER + 2 * NGROUPS * D_STATE + NHEADS   # 257
N_MAIN = 4 * D_INNER              # 256 packed main lanes [x | B | z | C]
COL_DT = N_MAIN                   # 256: dt column (MXU-folded, per review)
COL_D = N_MAIN + 1                # 257: mamba.D broadcast column (zero weights, bias=D)
N_WIDE = 384                      # padded fused width (3 vregs, lane-aligned slices)
HALF = 2 * D_INNER                # 128
OUT_PAD = 128                     # lane-dense output slab width (wrapper slices to 12)
RMS_EPS = 1e-5
BATCH = 8
ROW_TILE = 256                    # row tile for the batched ("parallel") grid path


def _silu_ref(v):
    return v * (1.0 / (1.0 + jnp.exp(-v)))


def _silu_fast(v):
    # kernel-only: approximate EUP reciprocal instead of exact f32 divide
    return v * pl.reciprocal(1.0 + jnp.exp(-v), approx=True)


def _softplus(v):
    # numerically stable softplus, matches torch.nn.functional.softplus
    return jnp.maximum(v, 0.0) + jnp.log(1.0 + jnp.exp(-jnp.abs(v)))


def _mamba_dyn_kernel(state_ref, action_ref, w_s_ref, w_a_ref, b_ref, w_out_ref, out_ref):
    f32 = jnp.float32
    # Fused (input_layer o in_proj o conv-affine) projection, 384 lanes wide:
    # columns [x | B | z | C | dt | D | zeros].  Bias row carries conv bias, dt_bias, D.
    pre = (jnp.dot(state_ref[...], w_s_ref[...], preferred_element_type=f32)
           + jnp.dot(action_ref[...], w_a_ref[...], preferred_element_type=f32)
           + b_ref[...])                                          # (rows, 384)

    # conv-SiLU on x/B/C lanes, gate-SiLU on z lanes (dt / D columns left raw)
    s = _silu_fast(pre[:, :N_MAIN])                               # (rows, 256)

    # Lane-aligned 128-wide product: lanes 0:64 = silu(x)*silu(z), lanes 64:128 = silu(B)*silu(C)
    prod = s[:, :HALF] * s[:, HALF:]                              # (rows, 128)
    lane = jax.lax.broadcasted_iota(jnp.int32, (1, HALF), 1)
    is_bc = lane >= D_INNER

    # single-step SSD (zero initial state): y = x * (dt * sum(B*C) + D)
    cb = jnp.sum(jnp.where(is_bc, prod, 0.0), axis=-1, keepdims=True)          # (rows, 1)
    ssq = jnp.sum(jnp.where(is_bc, 0.0, prod * prod), axis=-1, keepdims=True)  # sum over xz lanes

    dt = _softplus(pre[:, COL_DT:COL_DT + 1])                     # (rows, 1) dt head (NHEADS==1)
    d_term = pre[:, COL_D:COL_D + 1]                              # (rows, 1) == mamba.D broadcast
    scale = dt * cb + d_term

    # Gated RMSNorm folded analytically:  g = prod_xz * scale,  rms(g) = |scale|*rms(prod_xz)
    inv = jax.lax.rsqrt(scale * scale * (ssq * (1.0 / D_INNER)) + RMS_EPS)
    coef = scale * inv                                            # (rows, 1)

    # Fused (norm_w o out_proj o output_layer) matmul; lane 64 set to 1.0 so that row 64
    # of w_out (which holds output_layer.bias) adds the bias; rows 65:127 are zero.
    gfull = jnp.where(lane == D_INNER, 1.0, prod * coef)          # (rows, 128)
    # Lane-dense 128-wide output slab -> unmasked stores; wrapper slices to STATE_DIM.
    out_ref[...] = jnp.dot(gfull, w_out_ref[...], preferred_element_type=f32)


def mamba_dynamics_forward(state, action, fused):
    batch = state.shape[0]
    operands = (state, action, fused["w_s"], fused["w_a"], fused["b_main"],
                fused["w_out_ext"])

    if batch <= ROW_TILE or batch % ROW_TILE != 0:
        # Tiny batch: single invocation, whole arrays resident in VMEM (< 0.3 MiB).
        vmem = pl.BlockSpec(memory_space=pltpu.MemorySpace.VMEM)
        out = pl.pallas_call(
            _mamba_dyn_kernel,
            out_shape=jax.ShapeDtypeStruct((batch, OUT_PAD), jnp.float32),
            in_specs=[vmem] * 6,
            out_specs=vmem,
        )(*operands)
    else:
        # Large batch: row-tiled "parallel" grid (uses both TensorCores on v7x).
        # Double-buffered tiles + weights stay far under the 32 MiB scoped-VMEM default.
        row = lambda i: (i, 0)
        fixed = lambda i: (0, 0)
        out = pl.pallas_call(
            _mamba_dyn_kernel,
            out_shape=jax.ShapeDtypeStruct((batch, OUT_PAD), jnp.float32),
            grid_spec=pltpu.PrefetchScalarGridSpec(
                num_scalar_prefetch=0,
                grid=(batch // ROW_TILE,),
                in_specs=[pl.BlockSpec((ROW_TILE, STATE_DIM), row),
                          pl.BlockSpec((ROW_TILE, ACTION_DIM), row),
                          pl.BlockSpec((STATE_DIM, N_WIDE), fixed),
                          pl.BlockSpec((ACTION_DIM, N_WIDE), fixed),
                          pl.BlockSpec((1, N_WIDE), fixed),
                          pl.BlockSpec((HALF, OUT_PAD), fixed)],
                out_specs=pl.BlockSpec((ROW_TILE, OUT_PAD), row)),
            compiler_params=pltpu.CompilerParams(
                dimension_semantics=("parallel",)),
        )(*operands)
    return out[:, :STATE_DIM]


def init_params(key):
    """Parameters of the original (unfused) PyTorch module."""
    ks = jax.random.split(key, 12)

    def nrm(k, shape, scale=0.1):
        return scale * jax.random.normal(k, shape, jnp.float32)

    p = {}
    p["w_in"] = nrm(ks[0], (HIDDEN, IN_DIM))                  # input_layer.weight
    p["b_in"] = nrm(ks[1], (HIDDEN,))                         # input_layer.bias
    p["w_inproj"] = nrm(ks[2], (D_IN_PROJ, HIDDEN))           # mamba.in_proj.weight
    p["conv_w"] = nrm(ks[3], (CONV_DIM, 1, D_CONV))           # mamba.conv1d.weight
    p["conv_b"] = nrm(ks[4], (CONV_DIM,))                     # mamba.conv1d.bias
    p["dt_bias"] = nrm(ks[5], (NHEADS,))                      # mamba.dt_bias
    p["A_log"] = nrm(ks[6], (NHEADS,))  # unused at seqlen==1 (no decay step from zero state)
    p["D"] = 1.0 + nrm(ks[7], (NHEADS,))                      # mamba.D
    p["norm_w"] = 1.0 + nrm(ks[8], (D_INNER,))                # mamba.norm.weight
    p["w_outproj"] = nrm(ks[9], (HIDDEN, D_INNER))            # mamba.out_proj.weight
    p["w_out"] = nrm(ks[10], (STATE_DIM, HIDDEN))             # output_layer.weight
    p["b_out"] = nrm(ks[11], (STATE_DIM,))                    # output_layer.bias
    return p


def fuse_params(p):
    """Host-side (float32, HIGHEST precision) algebraic fusion of the parameter chain."""
    hp = jax.lax.Precision.HIGHEST
    # input_layer o in_proj  (two linears back-to-back, no nonlinearity between them)
    w_big = jnp.dot(p["w_in"].T, p["w_inproj"].T, precision=hp)      # (16, 257)
    b_big = jnp.dot(p["b_in"], p["w_inproj"].T, precision=hp)        # (257,)

    conv_w_last = p["conv_w"][:, 0, D_CONV - 1]                      # (192,) last causal tap
    # original in_proj column layout: z 0:64 | x 64:128 | B 128:192 | C 192:256 | dt 256
    # new packed layout:              x 0:64 | B 64:128 | z 128:192 | C 192:256
    perm = jnp.concatenate([jnp.arange(64, 128), jnp.arange(128, 192),
                            jnp.arange(0, 64), jnp.arange(192, 256)])
    ones64 = jnp.ones((D_INNER,), jnp.float32)
    zeros64 = jnp.zeros((D_INNER,), jnp.float32)
    col_scale = jnp.concatenate([conv_w_last[0:64], conv_w_last[64:128],
                                 ones64, conv_w_last[128:192]])       # conv tap (z untouched)
    col_shift = jnp.concatenate([p["conv_b"][0:64], p["conv_b"][64:128],
                                 zeros64, p["conv_b"][128:192]])      # conv bias (z untouched)

    # Fused wide projection, 384 lanes: [x|B|z|C] (0:256), dt (256), D (257), zero pad.
    w1 = jnp.zeros((IN_DIM, N_WIDE), jnp.float32)
    w1 = w1.at[:, :N_MAIN].set(w_big[:, :N_MAIN][:, perm] * col_scale[None, :])
    w1 = w1.at[:, COL_DT].set(w_big[:, N_MAIN])                       # dt column on the MXU

    b1 = jnp.zeros((N_WIDE,), jnp.float32)
    b1 = b1.at[:N_MAIN].set(b_big[:N_MAIN][perm] * col_scale + col_shift)
    b1 = b1.at[COL_DT].set(b_big[N_MAIN] + p["dt_bias"][0])           # fused dt bias
    b1 = b1.at[COL_D].set(p["D"][0])                                  # D via zero-weight column

    w_s = w1[:STATE_DIM]                                              # (12, 384)
    w_a = w1[STATE_DIM:]                                              # (4, 384)

    # norm_w o out_proj o output_layer, with output bias in row 64 (picked up by the
    # constant-1.0 lane in the kernel); everything else zero padding for lane alignment.
    w_mid = p["norm_w"][:, None] * jnp.dot(p["w_outproj"].T, p["w_out"].T,
                                           precision=hp)              # (64, 12)
    w_out_ext = jnp.zeros((HALF, OUT_PAD), jnp.float32)
    w_out_ext = w_out_ext.at[:D_INNER, :STATE_DIM].set(w_mid)
    w_out_ext = w_out_ext.at[D_INNER, :STATE_DIM].set(p["b_out"])

    # Safety invariants for the in-kernel lane tricks (per review):
    #   rows 65:127 of w_out_ext must be zero (lane-64 overwrite in gfull),
    #   output columns 12:128 must be zero (lane-dense padding),
    #   the D column must have zero weights (pre[:,257] == D exactly).
    assert float(jnp.max(jnp.abs(w_out_ext[D_INNER + 1:]))) == 0.0
    assert float(jnp.max(jnp.abs(w_out_ext[:, STATE_DIM:]))) == 0.0
    assert float(jnp.max(jnp.abs(w1[:, COL_D]))) == 0.0
    assert float(jnp.max(jnp.abs(w1[:, COL_D + 1:]))) == 0.0

    return {"w_s": w_s, "w_a": w_a, "b_main": b1[None, :], "w_out_ext": w_out_ext}


def reference_forward(state, action, p):
    """Unfused single-step Mamba2 reference (mirrors the PyTorch module at seqlen==1)."""
    hp = jax.lax.Precision.HIGHEST
    xin = jnp.concatenate([state, action], axis=-1)
    u = jnp.dot(xin, p["w_in"].T, precision=hp) + p["b_in"]
    zxbcdt = jnp.dot(u, p["w_inproj"].T, precision=hp)
    z = zxbcdt[:, :D_INNER]
    xBC = zxbcdt[:, D_INNER:D_INNER + CONV_DIM]
    dt = _softplus(zxbcdt[:, D_INNER + CONV_DIM:] + p["dt_bias"][None, :])
    xBC = _silu_ref(p["conv_w"][:, 0, D_CONV - 1][None, :] * xBC + p["conv_b"][None, :])
    x = xBC[:, :D_INNER]
    Bm = xBC[:, D_INNER:D_INNER + NGROUPS * D_STATE]
    Cm = xBC[:, D_INNER + NGROUPS * D_STATE:]
    cb = jnp.sum(Bm * Cm, axis=-1, keepdims=True)
    dt_full = jnp.repeat(dt, HEADDIM, axis=-1)
    d_full = jnp.repeat(p["D"], HEADDIM)
    y = x * (dt_full * cb + d_full[None, :])
    g = y * _silu_ref(z)
    inv = jax.lax.rsqrt(jnp.mean(g * g, axis=-1, keepdims=True) + RMS_EPS)
    yn = g * inv * p["norm_w"][None, :]
    yo = jnp.dot(yn, p["w_outproj"].T, precision=hp)
    return jnp.dot(yo, p["w_out"].T, precision=hp) + p["b_out"][None, :]


if __name__ == "__main__":
    key = jax.random.PRNGKey(0)
    k_state, k_action, k_params, k_state2, k_action2 = jax.random.split(key, 5)
    params = init_params(k_params)
    fused = fuse_params(params)

    # Small batch: grid-free single invocation.
    state = jax.random.normal(k_state, (BATCH, STATE_DIM), jnp.float32)
    action = jax.random.normal(k_action, (BATCH, ACTION_DIM), jnp.float32)
    out = jax.block_until_ready(mamba_dynamics_forward(state, action, fused))
    ref = reference_forward(state, action, params)
    assert out.shape == (BATCH, STATE_DIM)
    assert bool(jnp.all(jnp.isfinite(out)))
    assert bool(jnp.allclose(out, ref, atol=1e-2, rtol=1e-2)), float(jnp.max(jnp.abs(out - ref)))

    # Larger batch: exercises the row-tiled "parallel" grid path (2 TCs on v7x).
    big = 512
    state_b = jax.random.normal(k_state2, (big, STATE_DIM), jnp.float32)
    action_b = jax.random.normal(k_action2, (big, ACTION_DIM), jnp.float32)
    out_b = jax.block_until_ready(mamba_dynamics_forward(state_b, action_b, fused))
    ref_b = reference_forward(state_b, action_b, params)
    assert out_b.shape == (big, STATE_DIM)
    assert bool(jnp.all(jnp.isfinite(out_b)))
    assert bool(jnp.allclose(out_b, ref_b, atol=1e-2, rtol=1e-2)), \
        float(jnp.max(jnp.abs(out_b - ref_b)))

    print("KERNEL_OK")
</pallas_src>

<mosaic_0001>
module attributes {stable_mosaic.version = 11 : i64} {
  func.func @_mamba_dyn_kernel(%arg0: memref<8x12xf32, #tpu.memory_space<vmem>>, %arg1: memref<8x4xf32, #tpu.memory_space<vmem>>, %arg2: memref<12x384xf32, #tpu.memory_space<vmem>>, %arg3: memref<4x384xf32, #tpu.memory_space<vmem>>, %arg4: memref<1x384xf32, #tpu.memory_space<vmem>>, %arg5: memref<128x128xf32, #tpu.memory_space<vmem>>, %arg6: memref<8x128xf32, #tpu.memory_space<vmem>>) attributes {dimension_semantics = [], scalar_prefetch = 0 : i64, scratch_operands = 0 : i64, tpu.core_type = #tpu.core_type<tc>} {
    %c0 = arith.constant 0 : index
    %c0_0 = arith.constant 0 : index
    %0 = vector.load %arg0[%c0, %c0_0] : memref<8x12xf32, #tpu.memory_space<vmem>>, vector<8x12xf32>
    %c0_1 = arith.constant 0 : index
    %c0_2 = arith.constant 0 : index
    %1 = vector.load %arg2[%c0_1, %c0_2] : memref<12x384xf32, #tpu.memory_space<vmem>>, vector<12x384xf32>
    %cst = arith.constant dense<0.000000e+00> : vector<8x384xf32>
    %2 = tpu.matmul %0, %1, %cst {dimension_numbers = #tpu.dot_dimension_numbers<[1], [0], [0], [1], [0, 0, 1, 1], [], []>} : vector<8x12xf32>, vector<12x384xf32>, vector<8x384xf32> -> vector<8x384xf32>
    %c0_3 = arith.constant 0 : index
    %c0_4 = arith.constant 0 : index
    %3 = vector.load %arg1[%c0_3, %c0_4] : memref<8x4xf32, #tpu.memory_space<vmem>>, vector<8x4xf32>
    %c0_5 = arith.constant 0 : index
    %c0_6 = arith.constant 0 : index
    %4 = vector.load %arg3[%c0_5, %c0_6] : memref<4x384xf32, #tpu.memory_space<vmem>>, vector<4x384xf32>
    %cst_7 = arith.constant dense<0.000000e+00> : vector<8x384xf32>
    %5 = tpu.matmul %3, %4, %cst_7 {dimension_numbers = #tpu.dot_dimension_numbers<[1], [0], [0], [1], [0, 0, 1, 1], [], []>} : vector<8x4xf32>, vector<4x384xf32>, vector<8x384xf32> -> vector<8x384xf32>
    %6 = arith.addf %2, %5 : vector<8x384xf32>
    %c0_8 = arith.constant 0 : index
    %c0_9 = arith.constant 0 : index
    %7 = vector.load %arg4[%c0_8, %c0_9] : memref<1x384xf32, #tpu.memory_space<vmem>>, vector<1x384xf32>
    %8 = vector.broadcast %7 : vector<1x384xf32> to vector<8x384xf32>
    %9 = arith.addf %6, %8 : vector<8x384xf32>
    %10 = vector.extract_strided_slice %9 {offsets = [0, 0], sizes = [8, 256], strides = [1, 1]} : vector<8x384xf32> to vector<8x256xf32>
    %cst_10 = arith.constant 0.000000e+00 : f32
    %11 = vector.broadcast %cst_10 : f32 to vector<8x256xf32>
    %12 = arith.subf %11, %10 : vector<8x256xf32>
    %13 = math.exp %12 : vector<8x256xf32>
    %cst_11 = arith.constant 1.000000e+00 : f32
    %14 = vector.broadcast %cst_11 : f32 to vector<8x256xf32>
    %15 = arith.addf %14, %13 : vector<8x256xf32>
    %16 = tpu.reciprocal %15 {approx = true} : vector<8x256xf32> -> vector<8x256xf32>
    %17 = arith.mulf %10, %16 : vector<8x256xf32>
    %18 = vector.extract_strided_slice %17 {offsets = [0, 0], sizes = [8, 128], strides = [1, 1]} : vector<8x256xf32> to vector<8x128xf32>
    %19 = vector.extract_strided_slice %17 {offsets = [0, 128], sizes = [8, 128], strides = [1, 1]} : vector<8x256xf32> to vector<8x128xf32>
    %20 = arith.mulf %18, %19 : vector<8x128xf32>
    %21 = tpu.iota {dimensions = array<i32: 1>} : vector<1x128xi32>
    %c64_i32 = arith.constant 64 : i32
    %22 = vector.broadcast %c64_i32 : i32 to vector<1x128xi32>
    %23 = arith.cmpi sge, %21, %22 : vector<1x128xi32>
    %cst_12 = arith.constant 0.000000e+00 : f32
    %24 = vector.shape_cast %23 : vector<1x128xi1> to vector<1x128xi1>
    %25 = vector.broadcast %24 : vector<1x128xi1> to vector<8x128xi1>
    %26 = vector.broadcast %cst_12 : f32 to vector<8x128xf32>
    %27 = arith.select %25, %20, %26 : vector<8x128xi1>, vector<8x128xf32>
    %cst_13 = arith.constant dense<0.000000e+00> : vector<8xf32>
    %28 = vector.multi_reduction <add>, %27, %cst_13 [1] : vector<8x128xf32> to vector<8xf32>
    %29 = vector.shape_cast %28 : vector<8xf32> to vector<8x1xf32>
    %30 = arith.mulf %20, %20 : vector<8x128xf32>
    %cst_14 = arith.constant 0.000000e+00 : f32
    %31 = vector.shape_cast %23 : vector<1x128xi1> to vector<1x128xi1>
    %32 = vector.broadcast %31 : vector<1x128xi1> to vector<8x128xi1>
    %33 = vector.broadcast %cst_14 : f32 to vector<8x128xf32>
    %34 = arith.select %32, %33, %30 : vector<8x128xi1>, vector<8x128xf32>
    %cst_15 = arith.constant dense<0.000000e+00> : vector<8xf32>
    %35 = vector.multi_reduction <add>, %34, %cst_15 [1] : vector<8x128xf32> to vector<8xf32>
    %36 = vector.shape_cast %35 : vector<8xf32> to vector<8x1xf32>
    %37 = vector.extract_strided_slice %9 {offsets = [0, 256], sizes = [8, 1], strides = [1, 1]} : vector<8x384xf32> to vector<8x1xf32>
    %cst_16 = arith.constant 0.000000e+00 : f32
    %38 = vector.broadcast %cst_16 : f32 to vector<8x1xf32>
    %39 = arith.maximumf %37, %38 : vector<8x1xf32>
    %40 = math.absf %37 : vector<8x1xf32>
    %cst_17 = arith.constant 0.000000e+00 : f32
    %41 = vector.broadcast %cst_17 : f32 to vector<8x1xf32>
    %42 = arith.subf %41, %40 : vector<8x1xf32>
    %43 = math.exp %42 : vector<8x1xf32>
    %cst_18 = arith.constant 1.000000e+00 : f32
    %44 = vector.broadcast %cst_18 : f32 to vector<8x1xf32>
    %45 = arith.addf %44, %43 : vector<8x1xf32>
    %46 = math.log %45 : vector<8x1xf32>
    %47 = arith.addf %39, %46 : vector<8x1xf32>
    %48 = vector.extract_strided_slice %9 {offsets = [0, 257], sizes = [8, 1], strides = [1, 1]} : vector<8x384xf32> to vector<8x1xf32>
    %49 = arith.mulf %47, %29 : vector<8x1xf32>
    %50 = arith.addf %49, %48 : vector<8x1xf32>
    %51 = arith.mulf %50, %50 : vector<8x1xf32>
    %cst_19 = arith.constant 1.562500e-02 : f32
    %52 = vector.broadcast %cst_19 : f32 to vector<8x1xf32>
    %53 = arith.mulf %36, %52 : vector<8x1xf32>
    %54 = arith.mulf %51, %53 : vector<8x1xf32>
    %cst_20 = arith.constant 9.99999974E-6 : f32
    %55 = vector.broadcast %cst_20 : f32 to vector<8x1xf32>
    %56 = arith.addf %54, %55 : vector<8x1xf32>
    %57 = math.rsqrt %56 : vector<8x1xf32>
    %58 = arith.mulf %50, %57 : vector<8x1xf32>
    %c64_i32_21 = arith.constant 64 : i32
    %59 = vector.broadcast %c64_i32_21 : i32 to vector<1x128xi32>
    %60 = arith.cmpi eq, %21, %59 : vector<1x128xi32>
    %61 = vector.broadcast %58 : vector<8x1xf32> to vector<8x128xf32>
    %62 = arith.mulf %20, %61 : vector<8x128xf32>
    %cst_22 = arith.constant 1.000000e+00 : f32
    %63 = vector.shape_cast %60 : vector<1x128xi1> to vector<1x128xi1>
    %64 = vector.broadcast %63 : vector<1x128xi1> to vector<8x128xi1>
    %65 = vector.broadcast %cst_22 : f32 to vector<8x128xf32>
    %66 = arith.select %64, %65, %62 : vector<8x128xi1>, vector<8x128xf32>
    %c0_23 = arith.constant 0 : index
    %c0_24 = arith.constant 0 : index
    %67 = vector.load %arg5[%c0_23, %c0_24] : memref<128x128xf32, #tpu.memory_space<vmem>>, vector<128x128xf32>
    %cst_25 = arith.constant dense<0.000000e+00> : vector<8x128xf32>
    %68 = tpu.matmul %66, %67, %cst_25 {dimension_numbers = #tpu.dot_dimension_numbers<[1], [0], [0], [1], [0, 0, 1, 1], [], []>} : vector<8x128xf32>, vector<128x128xf32>, vector<8x128xf32> -> vector<8x128xf32>
    %c0_26 = arith.constant 0 : index
    %c0_27 = arith.constant 0 : index
    %69 = vector.load %arg6[%c0_26, %c0_27] : memref<8x128xf32, #tpu.memory_space<vmem>>, vector<8x128xf32>
    tpu.vector_store %arg6[%c0_26, %c0_27], %68 {strides = array<i32>} : memref<8x128xf32, #tpu.memory_space<vmem>>, vector<8x128xf32>,
    return
  }
}

</mosaic_0001>

<bundles_post_ra>
// kernel: tpu_custom_call.1
= control target key start
LH: loop header
LB: loop body
LE: loop exit
PB: predicated region body
PF: predicated region fallthrough
CT: control target
= control target key end

     0   :  { %11 = vsyncpa [#allocation3], 0  ;;  %s909_s0 = inlined_call_operand.vmem [shape: f32[8,12], index: 0, kind: input, shape index: {}]   ;;  %s910_s1 = inlined_call_operand.vmem [shape: f32[8,4], index: 1, kind: input, shape index: {}]   ;;  %s911_s2 = inlined_call_operand.hbm [shape: f32[12,384], index: 2, kind: input, shape index: {}]   ;;  %s912_s3 = inlined_call_operand.vmem [shape: f32[4,384], index: 3, kind: input, shape index: {}]   ;;  %s913_s4 = inlined_call_operand.vmem [shape: f32[1,384], index: 4, kind: input, shape index: {}]   ;;  %s914_s5 = inlined_call_operand.hbm [shape: f32[128,128], index: 5, kind: input, shape index: {}]   ;;  %s915_s6 = inlined_call_operand.hbm [shape: f32[8,128], index: 6, kind: output, shape index: {}]  }
   0x1   :  { %12 = vsyncpa [#allocation6], 0 }
   0x2   :  { %13 = vsyncpa [#allocation4], 0  ;;  %s767_s21 = smov [#allocation2]   ;;  %s695_s25 = scalar_lea.hbm %s911_s2, 768 }
   0x3   :  { %s23_s22 = sshll.u32 %s767_s21, 4  ;;  %p696_p0 = scmp.ne.s32.totalorder %s911_s2, %s695_s25  ;;  %s24_s22 = int_to_ptr.vmem [resolvable:$true] %s23_s22 }
   0x4   :  { %p699_p1 = scmp.lt.u32.totalorder %s695_s25, %s911_s2 }
   0x6   :  { %p701_p2 = pnand %p699_p1, %p696_p0 }
   0x8   :  { %704 = shalt.err (!%p701_p2)
}
   0x9   :  { %s705_s30 = scalar_lea.vmem %s24_s22, 768  ;;  %p710_p4 = scmp.lt.s32.totalorder %s24_s22, %s24_s22 }
   0xa   :  { %p706_p3 = scmp.ne.s32.totalorder %s24_s22, %s705_s30  ;;  %p711_p5 = scmp.lt.s32.totalorder %s705_s30, %s705_s30 }
   0xc   :  { %p712_p6 = por %p711_p5, %p710_p4 }
   0xe   :  { %p713_p7 = pnand %p712_p6, %p706_p3 }
  0x10   :  { %716 = shalt.err (!%p713_p7)
}
  0x11   :  { %s768_s7 = smov 384   ;;  %s769_s8 = smov 24  }
  0x12   :  { %29 = dma.hbm_to_vmem [thread:$0]  %s911_s2, 768, %s24_s22, [#allocation3], %s768_s7, %s768_s7, %s769_s8  }
  0x13   :  { %s770_s11 = smov [#allocation5]   ;;  %s717_s15 = scalar_lea.hbm %s914_s5, 2048 }
  0x14   :  { %s39_s12 = sshll.u32 %s770_s11, 4  ;;  %p718_p8 = scmp.ne.s32.totalorder %s914_s5, %s717_s15  ;;  %s40_s12 = int_to_ptr.vmem [resolvable:$true] %s39_s12 }
  0x15   :  { %p721_p9 = scmp.lt.u32.totalorder %s717_s15, %s914_s5 }
  0x17   :  { %p723_p10 = pnand %p721_p9, %p718_p8 }
  0x19   :  { %726 = shalt.err (!%p723_p10)
}
  0x1a   :  { %s727_s20 = scalar_lea.vmem %s40_s12, 2048  ;;  %p732_p12 = scmp.lt.s32.totalorder %s40_s12, %s40_s12 }
  0x1b   :  { %p728_p11 = scmp.ne.s32.totalorder %s40_s12, %s727_s20  ;;  %p733_p13 = scmp.lt.s32.totalorder %s727_s20, %s727_s20 }
  0x1d   :  { %p734_p0 = por %p733_p13, %p732_p12 }
  0x1f   :  { %p735_p1 = pnand %p734_p0, %p728_p11 }
  0x21   :  { %738 = shalt.err (!%p735_p1)
}
  0x22   :  { %s771_s2 = smov 128   ;;  %s772_s21 = smov 8  }
  0x23   :  { %45 = dma.hbm_to_vmem [thread:$0]  %s914_s5, 2048, %s40_s12, [#allocation6], %s771_s2, %s771_s2, %s772_s21  }
  0x24   :  { %761 = dma.done.wait [#allocation3], 768  }
  0x25   :  { %762 = vsyncadd [#allocation3], 4294966528 }
  0x26   :  { %763 = dma.done.wait [#allocation6], 2048  }
  0x27   :  { %764 = vsyncadd [#allocation6], 4294965248  ;;  %v773_v0 = vmov 0.0   ;;  %vm774_vm0 = vmmov 0   ;;  %v775_v1 = vmov 0.0|0.0   ;;  %v60_v2 = vld [vmem:[%s912_s3] sm:$0xff]  ;;  %v373_v17 = vlaneseq }
  0x28   :  { %140 = vmatprep.mubr.f32.mxu1 %v773_v0  ;;  %626 = vmatprep.mubr.msk.f32.mxu0 %vm774_vm0, %v773_v0  ;;  %vm69_vm1 = vcmask 1043456   ;;  %v64_v3 = vcombine.high %v60_v2, %v60_v2  ;;  %v54_v4 = vld [vmem:[#allocation2 + $0x8] sm:$0xff]  ;;  %v57_v5 = vld [vmem:[#allocation2 + $0x20] sm:$0xf]  ;;  %vm65_vm2 = vcmask 31744   ;;  %vm776_vm3 = vmmov 1  }
  0x29   :  { %639 = vmatprep.subr.bf16.mxu0 %v775_v1  ;;  %v59_v6 = vld [vmem:[%s910_s1] sm:$0xff]  ;;  %v61_v7 = vld [vmem:[%s912_s3 + $0x8] sm:$0xf]  ;;  %v629_v8 = vpack.c.bf16 %v57_v5, %v54_v4  ;;  %v56_v10 = vld [vmem:[#allocation2 + $0x18] sm:$0xf]  ;;  %vm217_vm5 = vcmask 97280  }
  0x2a   :  { %550 = vmatprep.subr.msk.mxu1 %vm69_vm1, %v64_v3  ;;  %v53_v9 = vld [vmem:[#allocation2] sm:$0xff]  ;;  %vm853_vm4 = vmpackc.low %vm69_vm1, %vm776_vm3  ;;  %v55_v13 = vld [vmem:[#allocation2 + $0x10] sm:$0xff]  ;;  %v374_v18 = vshrl.u32 %v373_v17, 7  ;;  %v878_v44 = vand.u32 127, %v373_v17  ;;  %v778_v53 = vmov 0  }
  0x2b   :  { %551 = vmatpush1.msk.msra.mxu1 %vm69_vm1, %v60_v2  ;;  %v632_v12 = vpack.c.bf16 %v56_v10, %v53_v9  ;;  %v58_v14 = vld [vmem:[#allocation2 + $0x28] sm:$0xf]  ;;  %v52_v15 = vld [vmem:[%s909_s0] sm:$0xff]  ;;  %s777_s0 = smov 127   ;;  %678 = vset.pattern.permute.xlu1 %v778_v53  ;;  %v447_v54 = vld [vmem:[#allocation5] sm:$0xff] }
  0x2c   :  { %552 = vmatmul.mubr.msk.f32.vlgmr.msra.gmra.mrb[0].mxu1 %vm65_vm2, %v59_v6  ;;  %582 = vmatprep.subr.mxu1 %v773_v0  ;;  %v636_v16 = vpack.c.bf16 %v58_v14, %v55_v13  ;;  %v375_v19 = vsub.s32 0, %v374_v18  ;;  %v371_v20 = vld [vmem:[%s913_s4] sm:$0x7]  ;;  %v379_v21 = vsub.s32 1, %v374_v18  ;;  %v383_v26 = vsub.s32 2, %v374_v18  ;;  %v448_v55 = vld [vmem:[#allocation5 + $0x8] sm:$0xff] }
  0x2d   :  { %583 = vmatpush3.msk.msra.mxu1 %vm69_vm1, %v61_v7  ;;  %584 = vmatprep.mubr.msk.f32.mxu1 %vm774_vm0, %v773_v0  ;;  %vm406_vm6 = vcmp.ge.s32.totalorder %v878_v44, 64  ;;  %v449_v56 = vld [vmem:[#allocation5 + $0x10] sm:$0xff]  ;;  %v640_v57 = vpack.c.bf16 %v448_v55, %v447_v54  ;;  %v450_v58 = vld [vmem:[#allocation5 + $0x18] sm:$0xff]  ;;  %v451_v60 = vld [vmem:[#allocation5 + $0x20] sm:$0xff]  ;;  %vm437_vm7 = vcmp.eq.s32.totalorder %v878_v44, 64  ;;  %s779_s4 = smov [#allocation7]  }
  0x2e   :  { %631 = vmatprep.subr.msk.bf16.mxu1 %vm853_vm4, %v629_v8  ;;  %v376_v24 = vrot.slane %v371_v20, %v375_v19  ;;  %v380_v25 = vrot.slane %v371_v20, %v379_v21  ;;  %v384_v32 = vrot.slane %v371_v20, %v383_v26  ;;  %679 = vset.pattern.permute.xlu0 %v778_v53  ;;  %v452_v61 = vld [vmem:[#allocation5 + $0x28] sm:$0xff]  ;;  %v453_v63 = vld [vmem:[#allocation5 + $0x30] sm:$0xff]  ;;  %v455_v3 = vld [vmem:[#allocation5 + $0x40] sm:$0xff]  ;;  %s540_s7 = sshll.u32 %s779_s4, 4  ;;  %s541_s7 = int_to_ptr.vmem [resolvable:$true] %s540_s7 }
  0x2f   :  { %641 = vmatpush3.bf16.msra.mxu0 %v640_v57  ;;  %v643_v59 = vpack.c.bf16 %v450_v58, %v449_v56  ;;  %v646_v62 = vpack.c.bf16 %v452_v61, %v451_v60  ;;  %v456_v4 = vld [vmem:[#allocation5 + $0x48] sm:$0xff]  ;;  %v458_v7 = vld [vmem:[#allocation5 + $0x58] sm:$0xff]  ;;  %v459_v9 = vld [vmem:[#allocation5 + $0x60] sm:$0xff]  ;;  %s739_s8 = scalar_lea.vmem %s541_s7, 128  ;;  %p744_p3 = scmp.lt.s32.totalorder %s541_s7, %s541_s7 }
  0x30   :  { %585 = vmatmul.mubr.msk.f32.vlgmr.msra.gmra.mrb[2].mxu1 %vm65_vm2, %v59_v6  ;;  %642 = vmatprep.subr.bf16.mxu0 %v775_v1  ;;  %v652_v5 = vpack.c.bf16 %v456_v4, %v455_v3  ;;  %v457_v6 = vld [vmem:[#allocation5 + $0x50] sm:$0xff]  ;;  %v460_v10 = vld [vmem:[#allocation5 + $0x68] sm:$0xff]  ;;  %p740_p2 = scmp.ne.s32.totalorder %s541_s7, %s739_s8  ;;  %p745_p4 = scmp.lt.s32.totalorder %s739_s8, %s739_s8 }
  0x31   :  { %634 = vmatpush1.bf16.msk.msra.mxu1 %vm853_vm4, %v632_v12  ;;  %294 = vmatprep.mubr.f32.mxu1 %v773_v0  ;;  %v655_v8 = vpack.c.bf16 %v458_v7, %v457_v6  ;;  %v658_v11 = vpack.c.bf16 %v460_v10, %v459_v9 }
  0x32   :  { %635 = vmatprep.subr.bf16.mxu1 %v775_v1  ;;  %p746_p5 = por %p745_p4, %p744_p3 }
  0x33   :  { %644 = vmatpush3.bf16.msra.mxu0 %v643_v59 }
  0x34   :  { %557 = vmatmul.mubr.msk.f32.vlgmr.msra.gmra.mrb[0].mxu1 %vm217_vm5, %v52_v15  ;;  %645 = vmatprep.subr.bf16.mxu0 %v775_v1  ;;  %p747_p6 = pnand %p746_p5, %p740_p2 }
  0x35   :  { %638 = vmatpush3.bf16.msk.msra.mxu1 %vm853_vm4, %v636_v16  ;;  %591 = vmatprep.mubr.msk.f32.mxu1 %vm774_vm0, %v773_v0  ;;  %v454_v0 = vld [vmem:[#allocation5 + $0x38] sm:$0xff] }
  0x36   :  { %v649_v2 = vpack.c.bf16 %v454_v0, %v453_v63 }
  0x37   :  { %647 = vmatpush3.bf16.msra.mxu0 %v646_v62 }
  0x38   :  { %592 = vmatmul.mubr.msk.f32.vlgmr.msra.gmra.mrb[4].mxu1 %vm217_vm5, %v52_v15  ;;  %648 = vmatprep.subr.bf16.mxu0 %v775_v1 }
  0x3b   :  { %650 = vmatpush3.bf16.msra.mxu0 %v649_v2 }
  0x3c   :  { %651 = vmatprep.subr.bf16.mxu0 %v775_v1 }
  0x3f   :  { %653 = vmatpush3.bf16.msra.mxu0 %v652_v5 }
  0x40   :  { %654 = vmatprep.subr.bf16.mxu0 %v775_v1 }
  0x43   :  { %656 = vmatpush3.bf16.msra.mxu0 %v655_v8 }
  0x44   :  { %657 = vmatprep.subr.bf16.mxu0 %v775_v1 }
  0x47   :  { %659 = vmatpush3.bf16.msra.mxu0 %v658_v11 }
  0x48   :  { %660 = vmatprep.subr.bf16.mxu0 %v775_v1 }
 0x103   :  { %v213_v22 = vpop.f32.mrb[2].mxu1 }
 0x104   :  { %v586_v23 = vpop.f32.mrb[3].mxu1 }
 0x107   :  { %v296_v27 = vpop.f32.mrb[0].mxu1 }
 0x108   :  { %v388_v28 = vadd.f32 %v376_v24, %v296_v27  ;;  %v298_v29 = vpop.f32.mrb[1].mxu1 }
 0x109   :  { %v389_v30 = vadd.f32 %v380_v25, %v298_v29 }
 0x10a   :  { %v391_v31 = vsub.f32 0.0, %v388_v28 }
 0x10b   :  { %v392_v33 = vsub.f32 0.0, %v389_v30  ;;  %v367_v34 = vpop.f32.mrb[4].mxu1 }
 0x10c   :  { %v393_v35 = vmul.f32 1.442695, %v391_v31  ;;  %v368_v36 = vadd.f32 %v367_v34, %v213_v22  ;;  %v593_v37 = vpop.f32.mrb[5].mxu1  ;;  %v462_v31 = vld [vmem:[#allocation5 + $0x78] sm:$0xff] }
 0x10d   :  { %v395_v38 = vmul.f32 1.442695, %v392_v33 }
 0x10e   :  { %681 = vpow2.f32 %v393_v35  ;;  %v875_v39 = vadd.f32 %v384_v32, %v368_v36 }
 0x10f   :  { %683 = vpow2.f32 %v395_v38 }
 0x110   :  { %427 = vrot.lane.b32.xlu1 %v875_v39, %s777_s0  ;;  %v417_v12 = vand.u32 2147483647, %v875_v39  ;;  %v416_v19 = vmax.f32 %v875_v39, 0.0 }
 0x112   :  { %v418_v13 = vsub.f32 0.0, %v417_v12 }
 0x114   :  { %v419_v14 = vmul.f32 1.442695, %v418_v13 }
 0x118   :  { %v682_v40 = vpop.eup %681 }
 0x119   :  { %v684_v41 = vpop.eup %683  ;;  %v397_v42 = vadd.f32 1.0, %v682_v40 }
 0x11a   :  { %v398_v43 = vadd.f32 1.0, %v684_v41 }
 0x11b   :  { %685 = vrcp.f32 %v397_v42 }
 0x11c   :  { %687 = vrcp.f32 %v398_v43 }
 0x11d   :  { %689 = vpow2.f32 %v419_v14 }
 0x125   :  { %v686_v45 = vpop.eup %685 }
 0x126   :  { %v688_v46 = vpop.eup %687  ;;  %v401_v47 = vmul.f32 %v686_v45, %v388_v28 }
 0x127   :  { %v402_v48 = vmul.f32 %v688_v46, %v389_v30  ;;  %v690_v15 = vpop.eup %689  ;;  %v461_v30 = vld [vmem:[#allocation5 + $0x70] sm:$0xff] }
 0x128   :  { %v421_v16 = vadd.f32 1.0, %v690_v15  ;;  %v661_v33 = vpack.c.bf16 %v462_v31, %v461_v30 }
 0x129   :  { %v881_v49 = vmul.f32 %v402_v48, %v401_v47 }
 0x12a   :  { %691 = vlog2.f32 %v421_v16  ;;  %662 = vmatpush3.bf16.msra.mxu0 %v661_v33 }
 0x12b   :  { %v409_v50 = vsel %vm406_vm6, %v881_v49, 0.0  ;;  %v412_v51 = vmul.f32 %v881_v49, %v881_v49 }
 0x12c   :  { %410 = vadd.xlane.f32.xlu0 %v409_v50 }
 0x12d   :  { %v413_v52 = vsel %vm406_vm6, 0.0, %v412_v51 }
 0x130   :  { %414 = vadd.xlane.f32.xlu0 %v413_v52 }
 0x134   :  { %v692_v17 = vpop.eup %691 }
 0x135   :  { %v423_v18 = vmul.f32 0.6931472, %v692_v17 }
 0x137   :  { %v424_v20 = vadd.f32 %v423_v18, %v416_v19 }
 0x182   :  { %v428_v23 = vpop.permute.xlu1 %427 }
 0x1b9   :  { %v411_v21 = vpop.xlane.xlu0 %410 }
 0x1ba   :  { %v425_v22 = vmul.f32 %v424_v20, %v411_v21 }
 0x1bc   :  { %v430_v24 = vadd.f32 %v428_v23, %v425_v22 }
 0x1bd   :  { %v415_v25 = vpop.xlane.xlu0 %414 }
 0x1be   :  { %v431_v26 = vmul.f32 %v430_v24, %v430_v24  ;;  %v432_v1 = vmul.f32 0.015625, %v415_v25 }
 0x1c0   :  { %v433_v27 = vmul.f32 %v432_v1, %v431_v26 }
 0x1c2   :  { %v434_v28 = vadd.f32 1e-05, %v433_v27 }
 0x1c4   :  { %693 = vrsqrt.f32 %v434_v28 }
 0x1ce   :  { %v694_v29 = vpop.eup %693 }
 0x1cf   :  { %v436_v32 = vmul.f32 %v694_v29, %v430_v24 }
 0x1d1   :  { %440 = vperm.xlu1 %678, %v436_v32  }
 0x250   :  { %v441_v34 = vpop.permute.xlu1 %440 }
 0x251   :  { %v443_v35 = vmul.f32 %v441_v34, %v881_v49 }
 0x253   :  { %v446_v36 = vsel %vm437_vm7, 1.0, %v443_v35 }
 0x254   :  { %627 = vmatmul.mubr.f32.vlgmr.msra.gmra.mrb[0].mxu0 %v446_v36 }
 0x327   :  { %v529_v37 = vpop.f32.mrb[0].mxu0 }
 0x328   :  { %533 = vst [vmem:[#allocation7] sm:$0xff] %v529_v37  ;;  %v628_v38 = vpop.f32.mrb[1].mxu0 }
 0x329   :  { %750 = shalt.err (!%p747_p6)
}
 0x32a   :  { %s751_s11 = scalar_lea.hbm %s915_s6, 128 }
 0x32b   :  { %p752_p7 = scmp.ne.s32.totalorder %s915_s6, %s751_s11  ;;  %p755_p8 = scmp.lt.u32.totalorder %s751_s11, %s915_s6 }
 0x32d   :  { %p757_p9 = pnand %p755_p8, %p752_p7 }
 0x32f   :  { %760 = shalt.err (!%p757_p9)
}
 0x330   :  { %543 = dma.vmem_to_hbm [thread:$0]  %s541_s7, 128, %s915_s6, [#allocation4]  }
 0x331   :  { %765 = dma.done.wait [#allocation4], 128  }
 0x332   :  { %766 = vsyncadd [#allocation4], 4294967168 }
 0x333   :  { %547 = vsyncpa [#allocation3], 1 }
 0x334   :  { %548 = vsyncpa [#allocation6], 1 }
 0x335   :  { %549 = vsyncpa [#allocation4], 1 }

</bundles_post_ra>
